<compile_context>
chip_gen: v6e
topology: v6e:2x2x1
jax: 0.10.0
libtpu: 0.0.40
codegen_flags: <defaults>
</compile_context>

<pallas_src>
import functools

import jax
import jax.numpy as jnp
from jax.experimental import pallas as pl
from jax.experimental.pallas import tpu as pltpu

EPS = 1e-4          # matches the reference EPS = 0.0001
LEAKY = 0.01        # F.leaky_relu default negative slope
BN_EPS = 1e-5       # torch.nn.BatchNorm1d default eps
VMEM_LIMIT = 32 * 1024 * 1024   # explicit scoped-VMEM budget (safe on v5e..v7x)


def _full_spec(shape):
    """Full-array BlockSpec for a 1-D grid pallas_call (constant block)."""
    n = len(shape)
    return pl.BlockSpec(shape, lambda i, _n=n: (0,) * _n)


# --------------------------- Phase A: fc + GCN layers -------------------------

def _gnn_kernel(x_ref, a_ref, fcW_ref, fcb_ref, convW_ref, convbn_ref, convb_ref,
                attW_ref, xcat_ref, xf_ref, *, layers):
    f32 = jnp.float32
    bf16 = jnp.bfloat16

    # NVnet.fc
    h = jnp.dot(x_ref[...], fcW_ref[...], preferred_element_type=f32) + fcb_ref[...]

    # ConvsBlock: (BN -> GCNConv -> ReLU) x layers; BN already folded into
    # convW (scale) and convbn (shift @ W) by the wrapper.
    a_bf = a_ref[...]                               # (Np, Np) bf16, loaded once
    hs = []
    for l in range(layers):                         # static unroll (layers small)
        hw = jnp.dot(h, convW_ref[l], preferred_element_type=f32) + convbn_ref[l]
        h = jnp.maximum(
            jnp.dot(a_bf, hw.astype(bf16), preferred_element_type=f32)
            + convb_ref[l], 0.0)
        hs.append(h)
    xcat = hs[0] if layers == 1 else jnp.concatenate(hs, axis=-1)
    xcat_ref[...] = xcat
    # ClfBlock.Features_For_All_Head (bias=False)
    xf_ref[...] = jnp.dot(xcat, attW_ref[...], preferred_element_type=f32)


# ------------------ Phase B: row-tiled recon loss + attention -----------------

def _recon_clf_kernel(xcat_ref, xf_ref, mask_ref, wpos_ref, wneg_ref,
                      psi_src_ref, psi_dst_ref, fc1W_ref, fc1b_ref,
                      fc2W_ref, fc2b_ref,
                      preds_ref, lrc_ref, *, tm, heads, Hc):
    f32 = jnp.float32
    row0 = pl.multiple_of(pl.program_id(0) * tm, tm)

    # ---- ReconBlock (this tile's rows vs all columns) ----
    xcat_all = xcat_ref[...]                                   # (Np, D) resident
    xcat_t = xcat_ref[pl.ds(row0, tm), :]                      # (tm, D)
    s = jax.lax.dot_general(xcat_t, xcat_all, (((1,), (1,)), ((), ())),
                            preferred_element_type=f32)        # (tm, Np)
    sig = jax.nn.sigmoid(s)
    loss = (wpos_ref[...] * (-jnp.log(EPS + sig)) +
            wneg_ref[...] * (-jnp.log(EPS + 1.0 - sig)))
    # per-row partial sum; the (scalar) sum over rows + 1/G is done in the wrapper
    lrc_ref[...] = jnp.sum(loss, axis=1, keepdims=True)        # (tm, 1)
    # TODO(synk): wpos/wneg are nonzero only on E edges; a scalar-prefetched
    # per-tile nonzero count + pl.when tile-skip would remove most of this work.

    # ---- ClfBlock: per-head masked attention aggregation ----
    xf_all = xf_ref[...]                                       # (Np, heads*Hc)
    xf_t = xf_ref[pl.ds(row0, tm), :]                          # (tm, heads*Hc)
    # phi dots fused across heads via block-diagonal psi slabs
    asrc = jnp.dot(xf_t, psi_src_ref[...], preferred_element_type=f32)       # (tm, heads)
    adst = jax.lax.dot_general(psi_dst_ref[...], xf_all, (((1,), (1,)), ((), ())),
                               preferred_element_type=f32)                    # (heads, Np)
    mask = mask_ref[...].astype(f32)                           # bf16 0/1 -> f32 once
    aggs = []
    for hd in range(heads):   # heads is tiny; one (tm, Np) temp live at a time
        pre = asrc[:, hd:hd + 1] + adst[hd:hd + 1, :]          # (tm, Np)
        pre = jnp.where(pre > 0, pre, LEAKY * pre)             # leaky_relu
        w = mask * jax.nn.sigmoid(pre)
        # scatter_add(x[dst] * w, src)  ==  (mask * w) @ x_head
        aggs.append(jnp.dot(w, xf_all[:, hd * Hc:(hd + 1) * Hc],
                            preferred_element_type=f32))       # (tm, Hc)
    xagg = aggs[0] if heads == 1 else jnp.concatenate(aggs, axis=-1)

    h1 = jnp.dot(xagg, fc1W_ref[...], preferred_element_type=f32) + fc1b_ref[...]
    h1 = jnp.where(h1 > 0, h1, LEAKY * h1)                     # leaky_relu
    # TODO(synk): F.dropout(p=0.5) is identity in eval mode; training-mode RNG dropout not implemented.
    logits = jnp.dot(h1, fc2W_ref[...], preferred_element_type=f32) + fc2b_ref[...]

    t = jnp.exp(logits - jnp.max(logits, axis=-1, keepdims=True)) + EPS
    preds_ref[...] = t / jnp.sum(t, axis=-1, keepdims=True)


# ------------------------------- JAX glue -------------------------------------

def build_gcn_adjacency(edge_index, N):
    A = jnp.zeros((N, N), jnp.float32).at[edge_index[0], edge_index[1]].set(1.0)
    A = jnp.maximum(A, jnp.eye(N, dtype=jnp.float32))            # add self-loops
    deg = jnp.sum(A, axis=1)
    dinv = jnp.where(deg > 0, 1.0 / jnp.sqrt(deg), 0.0)
    return dinv[:, None] * A * dinv[None, :]


def mean_pool_matrix(batch, G):
    onehot = (batch[None, :] == jnp.arange(G)[:, None]).astype(jnp.float32)  # (G, N)
    counts = jnp.sum(onehot, axis=1, keepdims=True)
    return onehot / jnp.maximum(counts, 1.0)


def edge_loss_weights(edge_index, batch, N, G):
    """Dense weights W[i,j] with sum(W * per_pair_loss) ==
    sum_g mean_{edges with src in g}(per_edge_loss)  (global_mean_pool + sum)."""
    if edge_index.shape[1] == 0:
        return jnp.zeros((N, N), jnp.float32)
    src, dst = edge_index[0], edge_index[1]
    g = batch[src]
    counts = jnp.zeros((G,), jnp.float32).at[g].add(1.0)
    w = 1.0 / counts[g]
    return jnp.zeros((N, N), jnp.float32).at[src, dst].add(w)


def init_params(key, num_features, cldim, layers, heads, Hc, num_classes):
    keys = iter(jax.random.split(key, 16))

    def u(shape, scale):
        return jax.random.uniform(next(keys), shape, jnp.float32, -scale, scale)

    p = {}
    p["fc_W"] = u((num_features, cldim), 1.0 / num_features ** 0.5)
    p["fc_b"] = u((cldim,), 1.0 / num_features ** 0.5)
    # BatchNorm1d default init (eval-mode running stats), stacked per layer.
    p["bn_gamma"] = jnp.ones((layers, cldim), jnp.float32)
    p["bn_beta"] = jnp.zeros((layers, cldim), jnp.float32)
    p["bn_mean"] = jnp.zeros((layers, cldim), jnp.float32)
    p["bn_var"] = jnp.ones((layers, cldim), jnp.float32)
    p["conv_W"] = u((layers, cldim, cldim), 1.0 / cldim ** 0.5)
    p["conv_b"] = u((layers, cldim), 1.0 / cldim ** 0.5)
    att_in = layers * cldim
    p["att_W"] = u((att_in, heads * Hc), 1.0 / att_in ** 0.5)          # bias=False
    p["phi"] = u((heads, 2 * Hc, 1), (6.0 / (2 * Hc + 1)) ** 0.5)      # xavier-ish
    p["fc1_W"] = u((heads * Hc, Hc), 1.0 / (heads * Hc) ** 0.5)
    p["fc1_b"] = u((Hc,), 1.0 / (heads * Hc) ** 0.5)
    p["fc2_W"] = u((Hc, num_classes), 1.0 / Hc ** 0.5)
    p["fc2_b"] = u((num_classes,), 1.0 / Hc ** 0.5)
    return p


@functools.partial(jax.jit, static_argnames=("layers", "heads", "Hc",
                                              "num_classes", "G", "block_rows"))
def nvnet_forward(params, x, edge_index, neg_edge_index, batch, mask, *,
                  layers, heads, Hc, num_classes, G, block_rows=256):
    f32, bf16 = jnp.float32, jnp.bfloat16
    N, _ = x.shape
    cldim = params["fc_W"].shape[1]
    D = layers * cldim
    HD = heads * Hc

    # Row tile: block_rows is the knob (halve it on v7x's 64 MiB VMEM).
    assert block_rows % 8 == 0
    tm = block_rows if N >= 2 * block_rows else N
    n_tiles = -(-N // tm)
    Np = n_tiles * tm                                    # padded node count

    # Dense graph-structure operands (built once per topology, under jit),
    # zero-padded to Np; padded rows/cols carry zero weights so they cannot
    # contribute to Lrc, attention, or the pooled outputs.
    a_hat = build_gcn_adjacency(edge_index, Np)
    wpos = edge_loss_weights(edge_index, batch, Np, G)
    wneg = edge_loss_weights(neg_edge_index, batch, Np, G)
    pool = mean_pool_matrix(batch, G)                    # (G, N) — wrapper-side
    x_p = jnp.pad(x.astype(f32), ((0, Np - N), (0, 0)))
    mask_p = jnp.pad(mask.astype(f32), ((0, Np - N), (0, Np - N)))

    # Fold eval-mode BatchNorm into the conv weights/biases.
    scale = params["bn_gamma"] * jax.lax.rsqrt(params["bn_var"] + BN_EPS)   # (L,c)
    shift = params["bn_beta"] - params["bn_mean"] * scale                   # (L,c)
    convW_f = (scale[:, :, None] * params["conv_W"]).astype(f32)            # (L,c,c)
    convbn = jnp.einsum("lc,lcd->ld", shift, params["conv_W"])[:, None, :].astype(f32)
    convb = params["conv_b"][:, None, :].astype(f32)

    # Fold per-head phi into block-diagonal slabs (one matmul for all heads).
    phi_src = params["phi"][:, :Hc, 0]                   # (heads, Hc)
    phi_dst = params["phi"][:, Hc:, 0]                   # (heads, Hc)
    eye_h = jnp.eye(heads, dtype=f32)
    psi_src = (eye_h[:, None, :] * phi_src[:, :, None]).reshape(HD, heads).astype(f32)
    psi_dst = (eye_h[:, :, None] * phi_dst[None, :, :]).reshape(heads, HD).astype(f32)

    # ------------------------------ Phase A ----------------------------------
    a_args = [
        x_p, a_hat.astype(bf16),
        params["fc_W"].astype(f32), params["fc_b"].reshape(1, cldim).astype(f32),
        convW_f, convbn, convb, params["att_W"].astype(f32),
    ]
    xcat, xf = pl.pallas_call(
        functools.partial(_gnn_kernel, layers=layers),
        out_shape=(jax.ShapeDtypeStruct((Np, D), f32),
                   jax.ShapeDtypeStruct((Np, HD), f32)),
        grid=(1,),
        in_specs=[_full_spec(a.shape) for a in a_args],
        out_specs=(_full_spec((Np, D)), _full_spec((Np, HD))),
        compiler_params=pltpu.CompilerParams(
            dimension_semantics=("arbitrary",),
            vmem_limit_bytes=VMEM_LIMIT),
    )(*a_args)

    # ------------------------------ Phase B ----------------------------------
    def row_spec(cols):
        return pl.BlockSpec((tm, cols), lambda i: (i, 0))

    b_args = [
        xcat, xf, mask_p.astype(bf16), wpos, wneg,
        psi_src, psi_dst,
        params["fc1_W"].astype(f32), params["fc1_b"].reshape(1, Hc).astype(f32),
        params["fc2_W"].astype(f32), params["fc2_b"].reshape(1, num_classes).astype(f32),
    ]
    in_specs = [
        _full_spec((Np, D)), _full_spec((Np, HD)),
        row_spec(Np), row_spec(Np), row_spec(Np),
        _full_spec((HD, heads)), _full_spec((heads, HD)),
        _full_spec((HD, Hc)), _full_spec((1, Hc)),
        _full_spec((Hc, num_classes)), _full_spec((1, num_classes)),
    ]
    preds_full, lrc_rows = pl.pallas_call(
        functools.partial(_recon_clf_kernel, tm=tm, heads=heads, Hc=Hc),
        out_shape=(jax.ShapeDtypeStruct((Np, num_classes), f32),
                   jax.ShapeDtypeStruct((Np, 1), f32)),
        grid=(n_tiles,),
        in_specs=in_specs,
        out_specs=(pl.BlockSpec((tm, num_classes), lambda i: (i, 0)),
                   pl.BlockSpec((tm, 1), lambda i: (i, 0))),
        compiler_params=pltpu.CompilerParams(
            dimension_semantics=("parallel",),       # megacore-shard rows (v7x)
            vmem_limit_bytes=VMEM_LIMIT),
    )(*b_args)

    # Tiny finishing reductions (G x C) on kernel outputs.
    preds = preds_full[:N]
    Lrc = jnp.sum(lrc_rows[:N]) * (1.0 / G)
    log_yp = jnp.log(jnp.dot(pool, preds))               # log(global_mean_pool)
    return log_yp, Lrc, preds


# ------------------------------- main -----------------------------------------

if __name__ == "__main__":
    N, F, cldim, layers = 16, 8, 8, 2
    heads, Hc, num_classes = 2, 8, 4
    npg = 8                                                  # nodes per graph
    G = 2                                                    # number of graphs (static)

    key = jax.random.PRNGKey(0)
    kx, kp = jax.random.split(key)
    x = jax.random.normal(kx, (N, F), jnp.float32)

    # two ring graphs of 8 nodes each, symmetric edges
    src, dst = [], []
    for base in (0, npg):
        for i in range(npg):
            a, b = base + i, base + (i + 1) % npg
            src += [a, b]
            dst += [b, a]
    edge_index = jnp.array([src, dst], dtype=jnp.int32)      # (2, 32)

    # negative (non-)edges: chords of the rings
    nsrc, ndst = [], []
    for base in (0, npg):
        for i in range(npg):
            nsrc.append(base + i)
            ndst.append(base + (i + 3) % npg)
    neg_edge_index = jnp.array([nsrc, ndst], dtype=jnp.int32)  # (2, 16)

    batch = jnp.array([0] * npg + [1] * npg, dtype=jnp.int32)

    # attention mask: adjacency + self loops (entries exactly 1.0 where edges)
    mask = jnp.zeros((N, N), jnp.float32).at[edge_index[0], edge_index[1]].set(1.0)
    mask = jnp.maximum(mask, jnp.eye(N, dtype=jnp.float32))

    params = init_params(kp, F, cldim, layers, heads, Hc, num_classes)

    # block_rows=8 -> 2 row tiles at this toy size (exercises the tiled path).
    log_yp, Lrc, preds = nvnet_forward(
        params, x, edge_index, neg_edge_index, batch, mask,
        layers=layers, heads=heads, Hc=Hc, num_classes=num_classes, G=G,
        block_rows=8)
    jax.block_until_ready((log_yp, Lrc, preds))
    assert log_yp.shape == (G, num_classes)
    assert preds.shape == (N, num_classes)
    assert Lrc.shape == ()
    assert bool(jnp.all(jnp.isfinite(log_yp))) and bool(jnp.isfinite(Lrc))
    print("KERNEL_OK")
</pallas_src>

<mosaic_0001>
module attributes {stable_mosaic.version = 11 : i64} {
  func.func private @main(%arg0: i32) attributes {dimension_semantics = [#tpu.dimension_semantics<core_parallel>], iteration_bounds = array<i64: 2>, tpu.core_type = #tpu.core_type<sc_scalar_subcore>, window_params = []} {
    return
  }
}

module attributes {stable_mosaic.version = 11 : i64} {
  func.func private @main(%arg0: i32) attributes {dimension_semantics = [#tpu.dimension_semantics<core_parallel>], iteration_bounds = array<i64: 2>, tpu.core_type = #tpu.core_type<sc_scalar_subcore>, window_params = []} {
    return
  }
}

module attributes {stable_mosaic.version = 11 : i64} {
  func.func @_gnn_kernel(%arg0: i32, %arg1: memref<16x8xf32, #tpu.memory_space<vmem>>, %arg2: memref<16x16xbf16, #tpu.memory_space<vmem>>, %arg3: memref<8x8xf32, #tpu.memory_space<vmem>>, %arg4: memref<1x8xf32, #tpu.memory_space<vmem>>, %arg5: memref<2x8x8xf32, #tpu.memory_space<vmem>>, %arg6: memref<2x1x8xf32, #tpu.memory_space<vmem>>, %arg7: memref<2x1x8xf32, #tpu.memory_space<vmem>>, %arg8: memref<16x16xf32, #tpu.memory_space<vmem>>, %arg9: memref<16x16xf32, #tpu.memory_space<vmem>>, %arg10: memref<16x16xf32, #tpu.memory_space<vmem>>) attributes {dimension_semantics = [#tpu.dimension_semantics<arbitrary>], iteration_bounds = array<i64: 1>, scalar_prefetch = 0 : i64, scratch_operands = 0 : i64, tpu.core_type = #tpu.core_type<tc>, window_params = [{pipeline_mode = #tpu.pipeline_mode<synchronous>, transform_indices = @transform_0, window_bounds = array<i64: 16, 8>}, {pipeline_mode = #tpu.pipeline_mode<synchronous>, transform_indices = @transform_1, window_bounds = array<i64: 16, 16>}, {pipeline_mode = #tpu.pipeline_mode<synchronous>, transform_indices = @transform_2, window_bounds = array<i64: 8, 8>}, {pipeline_mode = #tpu.pipeline_mode<synchronous>, transform_indices = @transform_3, window_bounds = array<i64: 1, 8>}, {pipeline_mode = #tpu.pipeline_mode<synchronous>, transform_indices = @transform_4, window_bounds = array<i64: 2, 8, 8>}, {pipeline_mode = #tpu.pipeline_mode<synchronous>, transform_indices = @transform_5, window_bounds = array<i64: 2, 1, 8>}, {pipeline_mode = #tpu.pipeline_mode<synchronous>, transform_indices = @transform_6, window_bounds = array<i64: 2, 1, 8>}, {pipeline_mode = #tpu.pipeline_mode<synchronous>, transform_indices = @transform_7, window_bounds = array<i64: 16, 16>}, {pipeline_mode = #tpu.pipeline_mode<synchronous>, transform_indices = @transform_8, window_bounds = array<i64: 16, 16>}, {pipeline_mode = #tpu.pipeline_mode<synchronous>, transform_indices = @transform_9, window_bounds = array<i64: 16, 16>}]} {
    %c0 = arith.constant 0 : index
    %c0_0 = arith.constant 0 : index
    %0 = vector.load %arg1[%c0, %c0_0] : memref<16x8xf32, #tpu.memory_space<vmem>>, vector<16x8xf32>
    %c0_1 = arith.constant 0 : index
    %c0_2 = arith.constant 0 : index
    %1 = vector.load %arg3[%c0_1, %c0_2] : memref<8x8xf32, #tpu.memory_space<vmem>>, vector<8x8xf32>
    %cst = arith.constant dense<0.000000e+00> : vector<16x8xf32>
    %2 = tpu.matmul %0, %1, %cst {dimension_numbers = #tpu.dot_dimension_numbers<[1], [0], [0], [1], [0, 0, 1, 1], [], []>} : vector<16x8xf32>, vector<8x8xf32>, vector<16x8xf32> -> vector<16x8xf32>
    %c0_3 = arith.constant 0 : index
    %c0_4 = arith.constant 0 : index
    %3 = vector.load %arg4[%c0_3, %c0_4] : memref<1x8xf32, #tpu.memory_space<vmem>>, vector<1x8xf32>
    %4 = vector.broadcast %3 : vector<1x8xf32> to vector<16x8xf32>
    %5 = arith.addf %2, %4 : vector<16x8xf32>
    %c0_5 = arith.constant 0 : index
    %c0_6 = arith.constant 0 : index
    %6 = vector.load %arg2[%c0_5, %c0_6] : memref<16x16xbf16, #tpu.memory_space<vmem>>, vector<16x16xbf16>
    %c0_7 = arith.constant 0 : index
    %c0_8 = arith.constant 0 : index
    %c0_9 = arith.constant 0 : index
    %7 = vector.load %arg5[%c0_7, %c0_8, %c0_9] : memref<2x8x8xf32, #tpu.memory_space<vmem>>, vector<1x8x8xf32>
    %8 = vector.shape_cast %7 : vector<1x8x8xf32> to vector<8x8xf32>
    %cst_10 = arith.constant dense<0.000000e+00> : vector<16x8xf32>
    %9 = tpu.matmul %5, %8, %cst_10 {dimension_numbers = #tpu.dot_dimension_numbers<[1], [0], [0], [1], [0, 0, 1, 1], [], []>} : vector<16x8xf32>, vector<8x8xf32>, vector<16x8xf32> -> vector<16x8xf32>
    %c0_11 = arith.constant 0 : index
    %c0_12 = arith.constant 0 : index
    %c0_13 = arith.constant 0 : index
    %10 = vector.load %arg6[%c0_11, %c0_12, %c0_13] : memref<2x1x8xf32, #tpu.memory_space<vmem>>, vector<1x1x8xf32>
    %11 = vector.shape_cast %10 : vector<1x1x8xf32> to vector<1x8xf32>
    %12 = vector.broadcast %11 : vector<1x8xf32> to vector<16x8xf32>
    %13 = arith.addf %9, %12 : vector<16x8xf32>
    %14 = arith.truncf %13 : vector<16x8xf32> to vector<16x8xbf16>
    %cst_14 = arith.constant dense<0.000000e+00> : vector<16x8xf32>
    %15 = tpu.matmul %6, %14, %cst_14 {dimension_numbers = #tpu.dot_dimension_numbers<[1], [0], [0], [1], [0, 0, 1, 1], [], []>} : vector<16x16xbf16>, vector<16x8xbf16>, vector<16x8xf32> -> vector<16x8xf32>
    %c0_15 = arith.constant 0 : index
    %c0_16 = arith.constant 0 : index
    %c0_17 = arith.constant 0 : index
    %16 = vector.load %arg7[%c0_15, %c0_16, %c0_17] : memref<2x1x8xf32, #tpu.memory_space<vmem>>, vector<1x1x8xf32>
    %17 = vector.shape_cast %16 : vector<1x1x8xf32> to vector<1x8xf32>
    %18 = vector.broadcast %17 : vector<1x8xf32> to vector<16x8xf32>
    %19 = arith.addf %15, %18 : vector<16x8xf32>
    %cst_18 = arith.constant 0.000000e+00 : f32
    %20 = vector.broadcast %cst_18 : f32 to vector<16x8xf32>
    %21 = arith.maximumf %19, %20 : vector<16x8xf32>
    %c1 = arith.constant 1 : index
    %c0_19 = arith.constant 0 : index
    %c0_20 = arith.constant 0 : index
    %22 = vector.load %arg5[%c1, %c0_19, %c0_20] : memref<2x8x8xf32, #tpu.memory_space<vmem>>, vector<1x8x8xf32>
    %23 = vector.shape_cast %22 : vector<1x8x8xf32> to vector<8x8xf32>
    %cst_21 = arith.constant dense<0.000000e+00> : vector<16x8xf32>
    %24 = tpu.matmul %21, %23, %cst_21 {dimension_numbers = #tpu.dot_dimension_numbers<[1], [0], [0], [1], [0, 0, 1, 1], [], []>} : vector<16x8xf32>, vector<8x8xf32>, vector<16x8xf32> -> vector<16x8xf32>
    %c1_22 = arith.constant 1 : index
    %c0_23 = arith.constant 0 : index
    %c0_24 = arith.constant 0 : index
    %25 = vector.load %arg6[%c1_22, %c0_23, %c0_24] : memref<2x1x8xf32, #tpu.memory_space<vmem>>, vector<1x1x8xf32>
    %26 = vector.shape_cast %25 : vector<1x1x8xf32> to vector<1x8xf32>
    %27 = vector.broadcast %26 : vector<1x8xf32> to vector<16x8xf32>
    %28 = arith.addf %24, %27 : vector<16x8xf32>
    %29 = arith.truncf %28 : vector<16x8xf32> to vector<16x8xbf16>
    %cst_25 = arith.constant dense<0.000000e+00> : vector<16x8xf32>
    %30 = tpu.matmul %6, %29, %cst_25 {dimension_numbers = #tpu.dot_dimension_numbers<[1], [0], [0], [1], [0, 0, 1, 1], [], []>} : vector<16x16xbf16>, vector<16x8xbf16>, vector<16x8xf32> -> vector<16x8xf32>
    %c1_26 = arith.constant 1 : index
    %c0_27 = arith.constant 0 : index
    %c0_28 = arith.constant 0 : index
    %31 = vector.load %arg7[%c1_26, %c0_27, %c0_28] : memref<2x1x8xf32, #tpu.memory_space<vmem>>, vector<1x1x8xf32>
    %32 = vector.shape_cast %31 : vector<1x1x8xf32> to vector<1x8xf32>
    %33 = vector.broadcast %32 : vector<1x8xf32> to vector<16x8xf32>
    %34 = arith.addf %30, %33 : vector<16x8xf32>
    %cst_29 = arith.constant 0.000000e+00 : f32
    %35 = vector.broadcast %cst_29 : f32 to vector<16x8xf32>
    %36 = arith.maximumf %34, %35 : vector<16x8xf32>
    %37 = tpu.concatenate %21, %36 in 1 : vector<16x8xf32>, vector<16x8xf32> -> vector<16x16xf32>
    %c0_30 = arith.constant 0 : index
    %c0_31 = arith.constant 0 : index
    %38 = vector.load %arg9[%c0_30, %c0_31] : memref<16x16xf32, #tpu.memory_space<vmem>>, vector<16x16xf32>
    tpu.vector_store %arg9[%c0_30, %c0_31], %37 {strides = array<i32>} : memref<16x16xf32, #tpu.memory_space<vmem>>, vector<16x16xf32>,
    %c0_32 = arith.constant 0 : index
    %c0_33 = arith.constant 0 : index
    %39 = vector.load %arg8[%c0_32, %c0_33] : memref<16x16xf32, #tpu.memory_space<vmem>>, vector<16x16xf32>
    %cst_34 = arith.constant dense<0.000000e+00> : vector<16x16xf32>
    %40 = tpu.matmul %37, %39, %cst_34 {dimension_numbers = #tpu.dot_dimension_numbers<[1], [0], [0], [1], [0, 0, 1, 1], [], []>} : vector<16x16xf32>, vector<16x16xf32>, vector<16x16xf32> -> vector<16x16xf32>
    %c0_35 = arith.constant 0 : index
    %c0_36 = arith.constant 0 : index
    %41 = vector.load %arg10[%c0_35, %c0_36] : memref<16x16xf32, #tpu.memory_space<vmem>>, vector<16x16xf32>
    tpu.vector_store %arg10[%c0_35, %c0_36], %40 {strides = array<i32>} : memref<16x16xf32, #tpu.memory_space<vmem>>, vector<16x16xf32>,
    return
  }
  func.func @transform_0(%arg0: i32) -> (i32, i32) {
    %c0_i32 = arith.constant 0 : i32
    %c0_i32_0 = arith.constant 0 : i32
    %c0_i32_1 = arith.constant 0 : i32
    return %c0_i32, %c0_i32_0 : i32, i32
  }
  func.func @transform_1(%arg0: i32) -> (i32, i32) {
    %c0_i32 = arith.constant 0 : i32
    %c0_i32_0 = arith.constant 0 : i32
    %c0_i32_1 = arith.constant 0 : i32
    return %c0_i32, %c0_i32_0 : i32, i32
  }
  func.func @transform_2(%arg0: i32) -> (i32, i32) {
    %c0_i32 = arith.constant 0 : i32
    %c0_i32_0 = arith.constant 0 : i32
    %c0_i32_1 = arith.constant 0 : i32
    return %c0_i32, %c0_i32_0 : i32, i32
  }
  func.func @transform_3(%arg0: i32) -> (i32, i32) {
    %c0_i32 = arith.constant 0 : i32
    %c0_i32_0 = arith.constant 0 : i32
    %c0_i32_1 = arith.constant 0 : i32
    return %c0_i32, %c0_i32_0 : i32, i32
  }
  func.func @transform_4(%arg0: i32) -> (i32, i32, i32) {
    %c0_i32 = arith.constant 0 : i32
    %c0_i32_0 = arith.constant 0 : i32
    %c0_i32_1 = arith.constant 0 : i32
    %c0_i32_2 = arith.constant 0 : i32
    return %c0_i32, %c0_i32_0, %c0_i32_1 : i32, i32, i32
  }
  func.func @transform_5(%arg0: i32) -> (i32, i32, i32) {
    %c0_i32 = arith.constant 0 : i32
    %c0_i32_0 = arith.constant 0 : i32
    %c0_i32_1 = arith.constant 0 : i32
    %c0_i32_2 = arith.constant 0 : i32
    return %c0_i32, %c0_i32_0, %c0_i32_1 : i32, i32, i32
  }
  func.func @transform_6(%arg0: i32) -> (i32, i32, i32) {
    %c0_i32 = arith.constant 0 : i32
    %c0_i32_0 = arith.constant 0 : i32
    %c0_i32_1 = arith.constant 0 : i32
    %c0_i32_2 = arith.constant 0 : i32
    return %c0_i32, %c0_i32_0, %c0_i32_1 : i32, i32, i32
  }
  func.func @transform_7(%arg0: i32) -> (i32, i32) {
    %c0_i32 = arith.constant 0 : i32
    %c0_i32_0 = arith.constant 0 : i32
    %c0_i32_1 = arith.constant 0 : i32
    return %c0_i32, %c0_i32_0 : i32, i32
  }
  func.func @transform_8(%arg0: i32) -> (i32, i32) {
    %c0_i32 = arith.constant 0 : i32
    %c0_i32_0 = arith.constant 0 : i32
    %c0_i32_1 = arith.constant 0 : i32
    return %c0_i32, %c0_i32_0 : i32, i32
  }
  func.func @transform_9(%arg0: i32) -> (i32, i32) {
    %c0_i32 = arith.constant 0 : i32
    %c0_i32_0 = arith.constant 0 : i32
    %c0_i32_1 = arith.constant 0 : i32
    return %c0_i32, %c0_i32_0 : i32, i32
  }
}

module attributes {stable_mosaic.version = 11 : i64} {
  func.func @_recon_clf_kernel(%arg0: i32, %arg1: memref<16x16xf32, #tpu.memory_space<vmem>>, %arg2: memref<16x16xf32, #tpu.memory_space<vmem>>, %arg3: memref<8x16xbf16, #tpu.memory_space<vmem>>, %arg4: memref<8x16xf32, #tpu.memory_space<vmem>>, %arg5: memref<8x16xf32, #tpu.memory_space<vmem>>, %arg6: memref<16x2xf32, #tpu.memory_space<vmem>>, %arg7: memref<2x16xf32, #tpu.memory_space<vmem>>, %arg8: memref<16x8xf32, #tpu.memory_space<vmem>>, %arg9: memref<1x8xf32, #tpu.memory_space<vmem>>, %arg10: memref<8x4xf32, #tpu.memory_space<vmem>>, %arg11: memref<1x4xf32, #tpu.memory_space<vmem>>, %arg12: memref<8x4xf32, #tpu.memory_space<vmem>>, %arg13: memref<8x1xf32, #tpu.memory_space<vmem>>) attributes {dimension_semantics = [#tpu.dimension_semantics<parallel>], iteration_bounds = array<i64: 2>, scalar_prefetch = 0 : i64, scratch_operands = 0 : i64, tpu.core_type = #tpu.core_type<tc>, window_params = [{pipeline_mode = #tpu.pipeline_mode<synchronous>, transform_indices = @transform_0, window_bounds = array<i64: 16, 16>}, {pipeline_mode = #tpu.pipeline_mode<synchronous>, transform_indices = @transform_1, window_bounds = array<i64: 16, 16>}, {transform_indices = @transform_2, window_bounds = array<i64: 8, 16>}, {transform_indices = @transform_3, window_bounds = array<i64: 8, 16>}, {transform_indices = @transform_4, window_bounds = array<i64: 8, 16>}, {pipeline_mode = #tpu.pipeline_mode<synchronous>, transform_indices = @transform_5, window_bounds = array<i64: 16, 2>}, {pipeline_mode = #tpu.pipeline_mode<synchronous>, transform_indices = @transform_6, window_bounds = array<i64: 2, 16>}, {pipeline_mode = #tpu.pipeline_mode<synchronous>, transform_indices = @transform_7, window_bounds = array<i64: 16, 8>}, {pipeline_mode = #tpu.pipeline_mode<synchronous>, transform_indices = @transform_8, window_bounds = array<i64: 1, 8>}, {pipeline_mode = #tpu.pipeline_mode<synchronous>, transform_indices = @transform_9, window_bounds = array<i64: 8, 4>}, {pipeline_mode = #tpu.pipeline_mode<synchronous>, transform_indices = @transform_10, window_bounds = array<i64: 1, 4>}, {transform_indices = @transform_11, window_bounds = array<i64: 8, 4>}, {transform_indices = @transform_12, window_bounds = array<i64: 8, 1>}]} {
    %c8_i32 = arith.constant 8 : i32
    %0 = arith.muli %arg0, %c8_i32 : i32
    %1 = tpu.assume_multiple %0, 8 : i32
    %c0 = arith.constant 0 : index
    %c0_0 = arith.constant 0 : index
    %2 = vector.load %arg1[%c0, %c0_0] : memref<16x16xf32, #tpu.memory_space<vmem>>, vector<16x16xf32>
    %3 = arith.index_cast %1 : i32 to index
    %c0_1 = arith.constant 0 : index
    %4 = vector.load %arg1[%3, %c0_1] : memref<16x16xf32, #tpu.memory_space<vmem>>, vector<8x16xf32>
    %cst = arith.constant dense<0.000000e+00> : vector<8x16xf32>
    %5 = tpu.matmul %4, %2, %cst {dimension_numbers = #tpu.dot_dimension_numbers<[1], [1], [0], [0], [0, 0, 1, 0], [], []>} : vector<8x16xf32>, vector<16x16xf32>, vector<8x16xf32> -> vector<8x16xf32>
    %6 = arith.negf %5 : vector<8x16xf32>
    %7 = math.exp %6 : vector<8x16xf32>
    %cst_2 = arith.constant 1.000000e+00 : f32
    %8 = vector.broadcast %cst_2 : f32 to vector<8x16xf32>
    %9 = arith.addf %8, %7 : vector<8x16xf32>
    %10 = arith.divf %8, %9 : vector<8x16xf32>
    %c0_3 = arith.constant 0 : index
    %c0_4 = arith.constant 0 : index
    %11 = vector.load %arg4[%c0_3, %c0_4] : memref<8x16xf32, #tpu.memory_space<vmem>>, vector<8x16xf32>
    %cst_5 = arith.constant 9.99999974E-5 : f32
    %12 = vector.broadcast %cst_5 : f32 to vector<8x16xf32>
    %13 = arith.addf %12, %10 : vector<8x16xf32>
    %14 = math.log %13 : vector<8x16xf32>
    %cst_6 = arith.constant 0.000000e+00 : f32
    %15 = vector.broadcast %cst_6 : f32 to vector<8x16xf32>
    %16 = arith.subf %15, %14 : vector<8x16xf32>
    %17 = arith.mulf %11, %16 : vector<8x16xf32>
    %c0_7 = arith.constant 0 : index
    %c0_8 = arith.constant 0 : index
    %18 = vector.load %arg5[%c0_7, %c0_8] : memref<8x16xf32, #tpu.memory_space<vmem>>, vector<8x16xf32>
    %cst_9 = arith.constant 1.000100e+00 : f32
    %19 = vector.broadcast %cst_9 : f32 to vector<8x16xf32>
    %20 = arith.subf %19, %10 : vector<8x16xf32>
    %21 = math.log %20 : vector<8x16xf32>
    %cst_10 = arith.constant 0.000000e+00 : f32
    %22 = vector.broadcast %cst_10 : f32 to vector<8x16xf32>
    %23 = arith.subf %22, %21 : vector<8x16xf32>
    %24 = arith.mulf %18, %23 : vector<8x16xf32>
    %25 = arith.addf %17, %24 : vector<8x16xf32>
    %cst_11 = arith.constant dense<0.000000e+00> : vector<8xf32>
    %26 = vector.multi_reduction <add>, %25, %cst_11 [1] : vector<8x16xf32> to vector<8xf32>
    %27 = vector.shape_cast %26 : vector<8xf32> to vector<8x1xf32>
    %c0_12 = arith.constant 0 : index
    %c0_13 = arith.constant 0 : index
    %28 = vector.load %arg13[%c0_12, %c0_13] : memref<8x1xf32, #tpu.memory_space<vmem>>, vector<8x1xf32>
    tpu.vector_store %arg13[%c0_12, %c0_13], %27 {strides = array<i32>} : memref<8x1xf32, #tpu.memory_space<vmem>>, vector<8x1xf32>,
    %c0_14 = arith.constant 0 : index
    %c0_15 = arith.constant 0 : index
    %29 = vector.load %arg2[%c0_14, %c0_15] : memref<16x16xf32, #tpu.memory_space<vmem>>, vector<16x16xf32>
    %30 = arith.index_cast %1 : i32 to index
    %c0_16 = arith.constant 0 : index
    %31 = vector.load %arg2[%30, %c0_16] : memref<16x16xf32, #tpu.memory_space<vmem>>, vector<8x16xf32>
    %c0_17 = arith.constant 0 : index
    %c0_18 = arith.constant 0 : index
    %32 = vector.load %arg6[%c0_17, %c0_18] : memref<16x2xf32, #tpu.memory_space<vmem>>, vector<16x2xf32>
    %cst_19 = arith.constant dense<0.000000e+00> : vector<8x2xf32>
    %33 = tpu.matmul %31, %32, %cst_19 {dimension_numbers = #tpu.dot_dimension_numbers<[1], [0], [0], [1], [0, 0, 1, 1], [], []>} : vector<8x16xf32>, vector<16x2xf32>, vector<8x2xf32> -> vector<8x2xf32>
    %c0_20 = arith.constant 0 : index
    %c0_21 = arith.constant 0 : index
    %34 = vector.load %arg7[%c0_20, %c0_21] : memref<2x16xf32, #tpu.memory_space<vmem>>, vector<2x16xf32>
    %cst_22 = arith.constant dense<0.000000e+00> : vector<2x16xf32>
    %35 = tpu.matmul %34, %29, %cst_22 {dimension_numbers = #tpu.dot_dimension_numbers<[1], [1], [0], [0], [0, 0, 1, 0], [], []>} : vector<2x16xf32>, vector<16x16xf32>, vector<2x16xf32> -> vector<2x16xf32>
    %c0_23 = arith.constant 0 : index
    %c0_24 = arith.constant 0 : index
    %36 = vector.load %arg3[%c0_23, %c0_24] : memref<8x16xbf16, #tpu.memory_space<vmem>>, vector<8x16xbf16>
    %37 = arith.extf %36 : vector<8x16xbf16> to vector<8x16xf32>
    %38 = vector.extract_strided_slice %33 {offsets = [0, 0], sizes = [8, 1], strides = [1, 1]} : vector<8x2xf32> to vector<8x1xf32>
    %39 = vector.extract_strided_slice %35 {offsets = [0, 0], sizes = [1, 16], strides = [1, 1]} : vector<2x16xf32> to vector<1x16xf32>
    %40 = vector.broadcast %38 : vector<8x1xf32> to vector<8x16xf32>
    %41 = vector.broadcast %39 : vector<1x16xf32> to vector<8x16xf32>
    %42 = arith.addf %40, %41 : vector<8x16xf32>
    %cst_25 = arith.constant 0.000000e+00 : f32
    %43 = vector.broadcast %cst_25 : f32 to vector<8x16xf32>
    %44 = arith.cmpf ogt, %42, %43 : vector<8x16xf32>
    %cst_26 = arith.constant 0.00999999977 : f32
    %45 = vector.broadcast %cst_26 : f32 to vector<8x16xf32>
    %46 = arith.mulf %45, %42 : vector<8x16xf32>
    %47 = arith.select %44, %42, %46 : vector<8x16xi1>, vector<8x16xf32>
    %48 = arith.negf %47 : vector<8x16xf32>
    %49 = math.exp %48 : vector<8x16xf32>
    %cst_27 = arith.constant 1.000000e+00 : f32
    %50 = vector.broadcast %cst_27 : f32 to vector<8x16xf32>
    %51 = arith.addf %50, %49 : vector<8x16xf32>
    %52 = arith.divf %50, %51 : vector<8x16xf32>
    %53 = arith.mulf %37, %52 : vector<8x16xf32>
    %54 = vector.extract_strided_slice %29 {offsets = [0, 0], sizes = [16, 8], strides = [1, 1]} : vector<16x16xf32> to vector<16x8xf32>
    %cst_28 = arith.constant dense<0.000000e+00> : vector<8x8xf32>
    %55 = tpu.matmul %53, %54, %cst_28 {dimension_numbers = #tpu.dot_dimension_numbers<[1], [0], [0], [1], [0, 0, 1, 1], [], []>} : vector<8x16xf32>, vector<16x8xf32>, vector<8x8xf32> -> vector<8x8xf32>
    %56 = vector.extract_strided_slice %33 {offsets = [0, 1], sizes = [8, 1], strides = [1, 1]} : vector<8x2xf32> to vector<8x1xf32>
    %57 = vector.extract_strided_slice %35 {offsets = [1, 0], sizes = [1, 16], strides = [1, 1]} : vector<2x16xf32> to vector<1x16xf32>
    %58 = vector.broadcast %56 : vector<8x1xf32> to vector<8x16xf32>
    %59 = vector.broadcast %57 : vector<1x16xf32> to vector<8x16xf32>
    %60 = arith.addf %58, %59 : vector<8x16xf32>
    %cst_29 = arith.constant 0.000000e+00 : f32
    %61 = vector.broadcast %cst_29 : f32 to vector<8x16xf32>
    %62 = arith.cmpf ogt, %60, %61 : vector<8x16xf32>
    %cst_30 = arith.constant 0.00999999977 : f32
    %63 = vector.broadcast %cst_30 : f32 to vector<8x16xf32>
    %64 = arith.mulf %63, %60 : vector<8x16xf32>
    %65 = arith.select %62, %60, %64 : vector<8x16xi1>, vector<8x16xf32>
    %66 = arith.negf %65 : vector<8x16xf32>
    %67 = math.exp %66 : vector<8x16xf32>
    %cst_31 = arith.constant 1.000000e+00 : f32
    %68 = vector.broadcast %cst_31 : f32 to vector<8x16xf32>
    %69 = arith.addf %68, %67 : vector<8x16xf32>
    %70 = arith.divf %68, %69 : vector<8x16xf32>
    %71 = arith.mulf %37, %70 : vector<8x16xf32>
    %72 = vector.extract_strided_slice %29 {offsets = [0, 8], sizes = [16, 8], strides = [1, 1]} : vector<16x16xf32> to vector<16x8xf32>
    %cst_32 = arith.constant dense<0.000000e+00> : vector<8x8xf32>
    %73 = tpu.matmul %71, %72, %cst_32 {dimension_numbers = #tpu.dot_dimension_numbers<[1], [0], [0], [1], [0, 0, 1, 1], [], []>} : vector<8x16xf32>, vector<16x8xf32>, vector<8x8xf32> -> vector<8x8xf32>
    %74 = tpu.concatenate %55, %73 in 1 : vector<8x8xf32>, vector<8x8xf32> -> vector<8x16xf32>
    %c0_33 = arith.constant 0 : index
    %c0_34 = arith.constant 0 : index
    %75 = vector.load %arg8[%c0_33, %c0_34] : memref<16x8xf32, #tpu.memory_space<vmem>>, vector<16x8xf32>
    %cst_35 = arith.constant dense<0.000000e+00> : vector<8x8xf32>
    %76 = tpu.matmul %74, %75, %cst_35 {dimension_numbers = #tpu.dot_dimension_numbers<[1], [0], [0], [1], [0, 0, 1, 1], [], []>} : vector<8x16xf32>, vector<16x8xf32>, vector<8x8xf32> -> vector<8x8xf32>
    %c0_36 = arith.constant 0 : index
    %c0_37 = arith.constant 0 : index
    %77 = vector.load %arg9[%c0_36, %c0_37] : memref<1x8xf32, #tpu.memory_space<vmem>>, vector<1x8xf32>
    %78 = vector.broadcast %77 : vector<1x8xf32> to vector<8x8xf32>
    %79 = arith.addf %76, %78 : vector<8x8xf32>
    %cst_38 = arith.constant 0.000000e+00 : f32
    %80 = vector.broadcast %cst_38 : f32 to vector<8x8xf32>
    %81 = arith.cmpf ogt, %79, %80 : vector<8x8xf32>
    %cst_39 = arith.constant 0.00999999977 : f32
    %82 = vector.broadcast %cst_39 : f32 to vector<8x8xf32>
    %83 = arith.mulf %82, %79 : vector<8x8xf32>
    %84 = arith.select %81, %79, %83 : vector<8x8xi1>, vector<8x8xf32>
    %c0_40 = arith.constant 0 : index
    %c0_41 = arith.constant 0 : index
    %85 = vector.load %arg10[%c0_40, %c0_41] : memref<8x4xf32, #tpu.memory_space<vmem>>, vector<8x4xf32>
    %cst_42 = arith.constant dense<0.000000e+00> : vector<8x4xf32>
    %86 = tpu.matmul %84, %85, %cst_42 {dimension_numbers = #tpu.dot_dimension_numbers<[1], [0], [0], [1], [0, 0, 1, 1], [], []>} : vector<8x8xf32>, vector<8x4xf32>, vector<8x4xf32> -> vector<8x4xf32>
    %c0_43 = arith.constant 0 : index
    %c0_44 = arith.constant 0 : index
    %87 = vector.load %arg11[%c0_43, %c0_44] : memref<1x4xf32, #tpu.memory_space<vmem>>, vector<1x4xf32>
    %88 = vector.broadcast %87 : vector<1x4xf32> to vector<8x4xf32>
    %89 = arith.addf %86, %88 : vector<8x4xf32>
    %cst_45 = arith.constant dense<0xFF800000> : vector<8xf32>
    %90 = vector.multi_reduction <maximumf>, %89, %cst_45 [1] : vector<8x4xf32> to vector<8xf32>
    %91 = vector.shape_cast %90 : vector<8xf32> to vector<8x1xf32>
    %92 = vector.broadcast %91 : vector<8x1xf32> to vector<8x4xf32>
    %93 = arith.subf %89, %92 : vector<8x4xf32>
    %94 = math.exp %93 : vector<8x4xf32>
    %cst_46 = arith.constant 9.99999974E-5 : f32
    %95 = vector.broadcast %cst_46 : f32 to vector<8x4xf32>
    %96 = arith.addf %94, %95 : vector<8x4xf32>
    %cst_47 = arith.constant dense<0.000000e+00> : vector<8xf32>
    %97 = vector.multi_reduction <add>, %96, %cst_47 [1] : vector<8x4xf32> to vector<8xf32>
    %98 = vector.shape_cast %97 : vector<8xf32> to vector<8x1xf32>
    %99 = vector.broadcast %98 : vector<8x1xf32> to vector<8x4xf32>
    %100 = arith.divf %96, %99 : vector<8x4xf32>
    %c0_48 = arith.constant 0 : index
    %c0_49 = arith.constant 0 : index
    %101 = vector.load %arg12[%c0_48, %c0_49] : memref<8x4xf32, #tpu.memory_space<vmem>>, vector<8x4xf32>
    tpu.vector_store %arg12[%c0_48, %c0_49], %100 {strides = array<i32>} : memref<8x4xf32, #tpu.memory_space<vmem>>, vector<8x4xf32>,
    return
  }
  func.func @transform_0(%arg0: i32) -> (i32, i32) {
    %c0_i32 = arith.constant 0 : i32
    %c0_i32_0 = arith.constant 0 : i32
    %c0_i32_1 = arith.constant 0 : i32
    return %c0_i32, %c0_i32_0 : i32, i32
  }
  func.func @transform_1(%arg0: i32) -> (i32, i32) {
    %c0_i32 = arith.constant 0 : i32
    %c0_i32_0 = arith.constant 0 : i32
    %c0_i32_1 = arith.constant 0 : i32
    return %c0_i32, %c0_i32_0 : i32, i32
  }
  func.func @transform_2(%arg0: i32) -> (i32, i32) {
    %c0_i32 = arith.constant 0 : i32
    %c0_i32_0 = arith.constant 0 : i32
    return %arg0, %c0_i32 : i32, i32
  }
  func.func @transform_3(%arg0: i32) -> (i32, i32) {
    %c0_i32 = arith.constant 0 : i32
    %c0_i32_0 = arith.constant 0 : i32
    return %arg0, %c0_i32 : i32, i32
  }
  func.func @transform_4(%arg0: i32) -> (i32, i32) {
    %c0_i32 = arith.constant 0 : i32
    %c0_i32_0 = arith.constant 0 : i32
    return %arg0, %c0_i32 : i32, i32
  }
  func.func @transform_5(%arg0: i32) -> (i32, i32) {
    %c0_i32 = arith.constant 0 : i32
    %c0_i32_0 = arith.constant 0 : i32
    %c0_i32_1 = arith.constant 0 : i32
    return %c0_i32, %c0_i32_0 : i32, i32
  }
  func.func @transform_6(%arg0: i32) -> (i32, i32) {
    %c0_i32 = arith.constant 0 : i32
    %c0_i32_0 = arith.constant 0 : i32
    %c0_i32_1 = arith.constant 0 : i32
    return %c0_i32, %c0_i32_0 : i32, i32
  }
  func.func @transform_7(%arg0: i32) -> (i32, i32) {
    %c0_i32 = arith.constant 0 : i32
    %c0_i32_0 = arith.constant 0 : i32
    %c0_i32_1 = arith.constant 0 : i32
    return %c0_i32, %c0_i32_0 : i32, i32
  }
  func.func @transform_8(%arg0: i32) -> (i32, i32) {
    %c0_i32 = arith.constant 0 : i32
    %c0_i32_0 = arith.constant 0 : i32
    %c0_i32_1 = arith.constant 0 : i32
    return %c0_i32, %c0_i32_0 : i32, i32
  }
  func.func @transform_9(%arg0: i32) -> (i32, i32) {
    %c0_i32 = arith.constant 0 : i32
    %c0_i32_0 = arith.constant 0 : i32
    %c0_i32_1 = arith.constant 0 : i32
    return %c0_i32, %c0_i32_0 : i32, i32
  }
  func.func @transform_10(%arg0: i32) -> (i32, i32) {
    %c0_i32 = arith.constant 0 : i32
    %c0_i32_0 = arith.constant 0 : i32
    %c0_i32_1 = arith.constant 0 : i32
    return %c0_i32, %c0_i32_0 : i32, i32
  }
  func.func @transform_11(%arg0: i32) -> (i32, i32) {
    %c0_i32 = arith.constant 0 : i32
    %c0_i32_0 = arith.constant 0 : i32
    return %arg0, %c0_i32 : i32, i32
  }
  func.func @transform_12(%arg0: i32) -> (i32, i32) {
    %c0_i32 = arith.constant 0 : i32
    %c0_i32_0 = arith.constant 0 : i32
    return %arg0, %c0_i32 : i32, i32
  }
}

</mosaic_0001>

<bundles_post_ra>
// kernel: nvnet_forward.2
= control target key start
LH: loop header
LB: loop body
LE: loop exit
PB: predicated region body
PF: predicated region fallthrough
CT: control target
= control target key end

     0   :  { %vm42_vm0 = vcmask 64512   ;;  %v597_v9 = vmov 0.0   ;;  %vm598_vm1 = vmmov 0   ;;  %vm228_vm2 = vcmask 130048   ;;  %s599_s29 = smov 8   ;;  %s719_s2 = inlined_call_operand.vmem [shape: f32[8,8], index: 2, kind: input, shape index: {}]   ;;  %s720_s0 = inlined_call_operand.vmem [shape: f32[16,8], index: 0, kind: input, shape index: {}]   ;;  %s721_s4 = inlined_call_operand.vmem [shape: f32[2,8,8], index: 4, kind: input, shape index: {}]   ;;  %s722_s3 = inlined_call_operand.vmem [shape: f32[1,8], index: 3, kind: input, shape index: {}]   ;;  %s723_s1 = inlined_call_operand.vmem [shape: bf16[16,16], index: 1, kind: input, shape index: {}]   ;;  %s724_s5 = inlined_call_operand.vmem [shape: f32[2,1,8], index: 5, kind: input, shape index: {}]   ;;  %s725_s6 = inlined_call_operand.vmem [shape: f32[2,1,8], index: 6, kind: input, shape index: {}]   ;;  %s726_s7 = inlined_call_operand.vmem [shape: f32[16,16], index: 7, kind: input, shape index: {}]   ;;  %s727_s8 = inlined_call_operand.vmem [shape: f32[16,16], index: 8, kind: output, shape index: {0}]   ;;  %s728_s9 = inlined_call_operand.vmem [shape: f32[16,16], index: 9, kind: output, shape index: {1}]  }
   0x1   :  { %v34_v0 = vld [vmem:[%s719_s2] sm:$0xff]  ;;  %v33_v2 = vld [vmem:[%s720_s0 + $0x8] sm:$0xff] }
   0x2   :  { %v32_v1 = vld [vmem:[%s720_s0] sm:$0xff]  ;;  %559 = vmatprep.subr.mxu0 %v34_v0  ;;  %v532_v17 = vld [vmem:[%s721_s4 + $0x8] sm:$0xff] }
   0x3   :  { %561 = vmatprep.mubr.msk.f32.mxu0 %vm42_vm0, %v32_v1  ;;  %560 = vmatpush3.msra.mxu0 %v34_v0  ;;  %v126_v3 = vld [vmem:[%s721_s4] sm:$0xff]  ;;  %v431_v33 = vld [vmem:[%s726_s7 + $0x8] sm:$0xff] }
   0x4   :  { %562 = vmatmul.mubr.msk.f32.vlgmr.msra.gmra.mxu0 %vm42_vm0, %v33_v2  ;;  %564 = vmatprep.subr.mxu1 %v126_v3  ;;  %v523_v5 = vld [vmem:[%s722_s3] ss:$0 sm:$0xff]  ;;  %v534_v28 = vld [vmem:[%s724_s5 + $0x1] ss:$0 sm:$0xff] }
   0x5   :  { %565 = vmatpush3.msra.mxu1 %v126_v3  ;;  %569 = vmatprep.subr.bf16.mxu0 %v597_v9  ;;  %v526_v11 = vld [vmem:[%s724_s5] ss:$0 sm:$0xff]  ;;  %v538_v35 = vld [vmem:[%s725_s6 + $0x1] ss:$0 sm:$0xff] }
   0x6   :  { %571 = vmatprep.mubr.msk.bf16.mxu0 %vm598_vm1, %v597_v9  ;;  %v596_v16 = vld [vmem:[%s723_s1] sm:$0xff]   ;;  %575 = vmatprep.subr.mxu1 %v532_v17 }
   0x7   :  { %v529_v18 = vld [vmem:[%s725_s6] ss:$0 sm:$0xff] }
   0x8   :  { %v430_v34 = vld [vmem:[%s726_s7] sm:$0xff] }
  0xc4   :  { %v563_v4 = vpop.f32.mrf.mxu0 }
  0xc5   :  { %v121_v8 = vadd.f32 %v563_v4, %v523_v5 }
  0xc6   :  { %v115_v6 = vpop.f32.mrf.mxu0 }
  0xc7   :  { %v116_v7 = vadd.f32 %v523_v5, %v115_v6 }
  0xc9   :  { %566 = vmatprep.mubr.msk.f32.mxu1 %vm42_vm0, %v116_v7 }
  0xca   :  { %567 = vmatmul.mubr.msk.f32.vlgmr.msra.gmra.mxu1 %vm42_vm0, %v121_v8 }
  0xcb   :  { %576 = vmatpush3.msra.mxu1 %v532_v17 }
  0xcc   :  { %580 = vmatprep.subr.bf16.mxu1 %v597_v9 }
 0x18a   :  { %v568_v10 = vpop.f32.mrf.mxu1 }
 0x18b   :  { %v212_v13 = vadd.f32 %v568_v10, %v526_v11 }
 0x18c   :  { %v206_v12 = vpop.f32.mrf.mxu1 }
 0x18d   :  { %v207_v14 = vadd.f32 %v526_v11, %v206_v12 }
 0x18f   :  { %v215_v15 = vpack.c.bf16 %v212_v13, %v207_v14 }
 0x191   :  { %570 = vmatpush3.bf16.msra.mxu0 %v215_v15 }
 0x192   :  { %586 = vmatprep.subr.mxu0 %v431_v33 }
 0x194   :  { %572 = vmatmul.mubr.msk.bf16.vlgmr.msra.gmra.mxu0 %vm228_vm2, %v596_v16 }
 0x195   :  { %587 = vmatpush3.msra.mxu0 %v431_v33 }
 0x196   :  { %588 = vmatprep.subr.mxu0 %v430_v34 }
 0x197   :  { %589 = vmatpush3.msra.mxu0 %v430_v34 }
 0x254   :  { %v266_v19 = vpop.f32.mrf.mxu0 }
 0x255   :  { %v267_v20 = vadd.f32 %v529_v18, %v266_v19 }
 0x256   :  { %v573_v21 = vpop.f32.mrf.mxu0 }
 0x257   :  { %v273_v22 = vmax.f32 %v267_v20, 0.0 }
 0x258   :  { %v269_v23 = vpop.f32.mrf.mxu0 }
 0x259   :  { %v270_v24 = vadd.f32 %v529_v18, %v269_v23  ;;  %577 = vmatprep.mubr.msk.f32.mxu1 %vm42_vm0, %v273_v22 }
 0x25a   :  { %v574_v25 = vpop.f32.mrf.mxu0 }
 0x25b   :  { %v274_v26 = vmax.f32 %v270_v24, 0.0 }
 0x25d   :  { %578 = vmatmul.mubr.msk.f32.vlgmr.msra.gmra.mxu1 %vm42_vm0, %v274_v26 }
 0x25e   :  { %582 = vmatprep.mubr.msk.bf16.mxu1 %vm598_vm1, %v597_v9 }
 0x31d   :  { %v579_v27 = vpop.f32.mrf.mxu1 }
 0x31e   :  { %v363_v30 = vadd.f32 %v579_v27, %v534_v28 }
 0x31f   :  { %v357_v29 = vpop.f32.mrf.mxu1 }
 0x320   :  { %v358_v31 = vadd.f32 %v534_v28, %v357_v29 }
 0x322   :  { %v366_v32 = vpack.c.bf16 %v363_v30, %v358_v31 }
 0x324   :  { %581 = vmatpush3.bf16.msra.mxu1 %v366_v32 }
 0x327   :  { %583 = vmatmul.mubr.msk.bf16.vlgmr.msra.gmra.mxu1 %vm228_vm2, %v596_v16 }
 0x3e7   :  { %v409_v36 = vpop.f32.mrf.mxu1 }
 0x3e8   :  { %v410_v37 = vadd.f32 %v538_v35, %v409_v36 }
 0x3e9   :  { %v584_v38 = vpop.f32.mrf.mxu1 }
 0x3ea   :  { %v416_v39 = vmax.f32 %v410_v37, 0.0 }
 0x3eb   :  { %v412_v40 = vpop.f32.mrf.mxu1 }
 0x3ec   :  { %v413_v41 = vadd.f32 %v538_v35, %v412_v40  ;;  %420 = vrot.lane.b32.xlu0 %v416_v39, %s599_s29 }
 0x3ed   :  { %v585_v42 = vpop.f32.mrf.mxu1 }
 0x3ee   :  { %v417_v43 = vmax.f32 %v413_v41, 0.0 }
 0x3f0   :  { %422 = vrot.lane.b32.xlu0 %v417_v43, %s599_s29 }
 0x45e   :  { %v421_v44 = vpop.permute.xlu0 %420 }
 0x45f   :  { %v426_v45 = vsel %vm42_vm0, %v273_v22, %v421_v44 }
 0x460   :  { %428 = vst.msk [vmem:[%s727_s8] sm:$0xff] %vm228_vm2, %v426_v45  ;;  %590 = vmatprep.mubr.msk.f32.mxu0 %vm228_vm2, %v426_v45 }
 0x462   :  { %v423_v46 = vpop.permute.xlu0 %422 }
 0x463   :  { %v427_v47 = vsel %vm42_vm0, %v274_v26, %v423_v46 }
 0x464   :  { %429 = vst.msk [vmem:[%s727_s8 + $0x8] sm:$0xff] %vm228_vm2, %v427_v47  ;;  %591 = vmatmul.mubr.msk.f32.vlgmr.msra.gmra.mxu0 %vm228_vm2, %v427_v47 }
 0x524   :  { %v592_v48 = vpop.f32.mrf.mxu0 }
 0x525   :  { %514 = vst.msk [vmem:[%s728_s9 + $0x8] sm:$0xff] %vm228_vm2, %v592_v48 }
 0x526   :  { %v504_v49 = vpop.f32.mrf.mxu0 }
 0x527   :  { %513 = vst.msk [vmem:[%s728_s9] sm:$0xff] %vm228_vm2, %v504_v49 }

// kernel: nvnet_forward.3
= control target key start
LH: loop header
LB: loop body
LE: loop exit
PB: predicated region body
PF: predicated region fallthrough
CT: control target
= control target key end

     0   :  { %18 = vsyncpa [#allocation3], 0  ;;  %s1756_s0 = inlined_call_operand.vmem [shape: f32[16,16], index: 0, kind: input, shape index: {}]   ;;  %s1757_s1 = inlined_call_operand.vmem [shape: f32[16,16], index: 1, kind: input, shape index: {}]   ;;  %s1758_s2 = inlined_call_operand.vmem [shape: bf16[16,16], index: 2, kind: input, shape index: {}]   ;;  %s1759_s3 = inlined_call_operand.vmem [shape: f32[16,16], index: 3, kind: input, shape index: {}]   ;;  %s1760_s4 = inlined_call_operand.hbm [shape: f32[16,16], index: 4, kind: input, shape index: {}]   ;;  %s1761_s5 = inlined_call_operand.vmem [shape: f32[16,2], index: 5, kind: input, shape index: {}]   ;;  %s1762_s6 = inlined_call_operand.vmem [shape: f32[2,16], index: 6, kind: input, shape index: {}]   ;;  %s1763_s7 = inlined_call_operand.vmem [shape: f32[16,8], index: 7, kind: input, shape index: {}]   ;;  %s1764_s8 = inlined_call_operand.vmem [shape: f32[1,8], index: 8, kind: input, shape index: {}]   ;;  %s1765_s9 = inlined_call_operand.vmem [shape: f32[8,4], index: 9, kind: input, shape index: {}]   ;;  %s1766_s10 = inlined_call_operand.vmem [shape: f32[1,4], index: 10, kind: input, shape index: {}]   ;;  %s1767_s11 = inlined_call_operand.vmem [shape: f32[16,4], index: 11, kind: output, shape index: {0}]   ;;  %s1768_s12 = inlined_call_operand.vmem [shape: f32[16,1], index: 12, kind: output, shape index: {1}]  }
   0x1   :  { %20 = vsyncpa [#allocation3 + $0x1], 0  ;;  %s1545_s21 = smov 0   ;;  %s1547_s22 = smov 0  }
   0x2   :  { %s1549_s23 = smov 0   ;;  %s1551_s24 = smov 0  }
   0x3 LB: > { %1771 = sst [smem:[#allocation5_spill]] %s1467_s23  ;;  %s1564_s25 = sadd.s32 4294967295, %s1471_s24   ;;  %s1471_s24 = sphi %s1551_s24, %s1782_s24   ;;  %s1467_s23 = sphi %s1549_s23, %s1779_s23   ;;  %s1463_s22 = sphi %s1547_s22, %s1781_s22   ;;  %s1459_s21 = sphi %s1545_s21, %s1780_s21  }
   0x4   : > { %s1567_s26 = sadd.s32 1, %s1471_s24   ;;  %s127_s28 = sadd.s32 1, %s1467_s23 }
   0x5   : > { %s124_s27 = ssub.s32 %s1471_s24, %s1567_s26  ;;  %p134_p1 = scmp.ne.s32.totalorder %s1467_s23, %s1463_s22 }
   0x6   : > { %p125_p0 = scmp.eq.s32.totalorder %s124_s27, 0  ;;  %p135_p2 = scmp.eq.s32.totalorder %s1471_s24, 0 }
   0x7   : > { %p140_p3 = scmp.ne.s32.totalorder %s1463_s22, %s1459_s21  ;;  %p141_p5 = scmp.eq.s32.totalorder %s1564_s25, 0 }
   0x8   : > { %s1577_s29 = scalar_select %p125_p0, %s1467_s23, %s127_s28  }
   0x9   : > { %p136_p4 = por %p135_p2, %p134_p1  ;;  %p1348_p6 = scmp.lt.s32.totalorder %s1471_s24, 2 }
   0xa   : > { %1772 = sst [smem:[#allocation6_spill]] %s1577_s29  ;;  %p1581_p7 = por %p141_p5, %p140_p3 }
   0xb   : > { %s380_s13 = sand.u32 1, %s1467_s23   ;;  %s1249_s15 = sshll.u32 %s1471_s24, 7 }
   0xc   : > { %s1773_s30 = scalar_select %p1581_p7, 1, 0 }
   0xd   : > { %s1248_s14 = sshll.u32 %s380_s13, 3  ;;  %s1590_s18 = scalar_lea.hbm %s1760_s4, %s1249_s15 }
   0xe   : > { %s384_s19 = scalar_lea.vmem [#allocation2], %s1248_s14  ;;  %p1594_p8 = pnand %p1348_p6, %p136_p4 }
   0xf   : > { %s391_s20 = sshll.u32 %s384_s19, 4  ;;  %s381_s27 = scalar_lea.sflag [#allocation3], %s380_s13  ;;  %s1592_s20 = int_to_ptr.vmem [resolvable:$true] %s391_s20 }
  0x10   : > { %s1409_s28 = scalar_lea.hbm %s1590_s18, 128  ;;  %p1411_p12 = pneg %p1594_p8 }
  0x11   : > { %p1410_p11 = scmp.ne.s32.totalorder %s1590_s18, %s1409_s28  ;;  %s1414_s14 = scalar_lea.hbm %s1760_s4, 256 }
  0x12   : > { %p1415_p1 = scmp.lt.s32.totalorder %s1590_s18, %s1760_s4  ;;  %p1416_p2 = scmp.lt.s32.totalorder %s1414_s14, %s1409_s28 }
  0x13   : > { %p1412_p13 = pnand %p1411_p12, %p1410_p11 }
  0x14   : > { %p1417_p3 = por %p1416_p2, %p1415_p1 }
  0x15   : > { %p1413_p0 = pneg %p1412_p13 }
  0x17   : > { %p1418_p4 = pnand %p1417_p3, %p1413_p0 }
  0x19   : > { %1421 = shalt.err (!%p1418_p4)
}
  0x1a   : > { %s1422_s13 = scalar_lea.vmem %s1592_s20, 128  ;;  %s1473_s29 = smov [#allocation2]  }
  0x1b   : > { %p1423_p5 = scmp.ne.s32.totalorder %s1592_s20, %s1422_s13  ;;  %s1427_s23 = sshll.u32 %s1473_s29, 4  ;;  %s1428_s23 = int_to_ptr.vmem [resolvable:$false] %s1427_s23 }
  0x1c   : > { %s1429_s15 = scalar_lea.vmem %s1428_s23, 256  ;;  %p1430_p13 = scmp.lt.s32.totalorder %s1592_s20, %s1428_s23 }
  0x1d   : > { %p1425_p6 = pnand %p1423_p5, %p1411_p12  ;;  %p1431_p9 = scmp.lt.s32.totalorder %s1429_s15, %s1422_s13 }
  0x1f   : > { %p1426_p11 = pneg %p1425_p6  ;;  %p1432_p10 = por %p1431_p9, %p1430_p13 }
  0x21   : > { %p1433_p7 = pnand %p1432_p10, %p1426_p11 }
  0x23   : > { %1436 = shalt.err (!%p1433_p7)
}
  0x24   : > { %1347 = dma.hbm_to_vmem [thread:$0]  (!%p1594_p8), %s1590_s18, 128, %s1592_s20, %s381_s27  }
  0x25   : > { %p1775_p0 = scmp.lt.s32.totalorder %s1471_s24, 3  ;;  %p1776_p1 = scmp.ge.s32.totalorder %s1471_s24, 1 }
  0x27   : > { %p397_p12 = pnand %p1776_p1, %p1775_p0 }
  0x28   : > { %s402_s29 = sand.u32 (!%p397_p12), 1, %s1463_s22   ;;  %p1777_p7 = scmp.ne.s32.totalorder (!%p397_p12), %s1773_s30, 0 }
  0x29   : > { %400 = sbr.rel (%p397_p12) target bundleno = 1431 (0x597), region = 64  ;;  %s1623_s28 = sshll.u32 (!%p397_p12), %s402_s29, 3 }
  0x2a   : > { %s403_s23 = scalar_lea.sflag (!%p397_p12), [#allocation3], %s402_s29  ;;  %s406_s16 = scalar_lea.vmem (!%p397_p12), [#allocation2], %s1623_s28 }
  0x2e   : > { %1454 = dma.done.wait (%p1777_p7), %s403_s23, 128  }
  0x2f   : > { %1456 = vsyncadd (%p1777_p7), %s403_s23, 4294967168  ;;  %v1474_v0 = vmov 0.0   ;;  %vm1475_vm0 = vmmov 0   ;;  %s1256_s24 = sshll.u32 %s1564_s25, 3  ;;  %v1476_v1 = vmov 0   ;;  %v588_v2 = vld [vmem:[%s1761_s5 + $0x8] sm:$0xff]  ;;  %v749_v16 = vlaneseq }
  0x30   : > { %1302 = vmatprep.subr.mxu1 %v1474_v0  ;;  %1306 = vmatprep.mubr.msk.f32.mxu1 %vm1475_vm0, %v1474_v0  ;;  %s585_s20 = scalar_lea.vmem %s1757_s1, %s1256_s24  ;;  %v587_v3 = vld [vmem:[%s1761_s5] sm:$0xff]  ;;  %vm479_vm1 = vcmask 130048   ;;  %v584_v5 = vld [vmem:[%s1757_s1 + $0x8] sm:$0xff]  ;;  %s1477_s18 = smov 120   ;;  %v1478_v10 = vmov 1   ;;  %vm939_vm4 = vcmask 64512  }
  0x31   : > { %1387 = vset.pattern.permute.xlu0 %v1476_v1  ;;  %1295 = vmatprep.subr.mxu0 %v1474_v0  ;;  %v586_v4 = vld [vmem:[%s585_s20] sm:$0xff]  ;;  %v476_v13 = vld [vmem:[%s1756_s0 + $0x8] sm:$0xff]  ;;  %s477_s13 = scalar_lea.vmem %s1756_s0, %s1256_s24  ;;  %v750_v17 = vshrl.u32 %v749_v16, 7  ;;  %p458_p8 = scmp.lt.s32.totalorder %s1564_s25, 1  ;;  %vm1107_vm6 = vcmask 31744   ;;  %vm581_vm7 = vcmask 7168  }
  0x32   : > { %1299 = vmatprep.mubr.msk.f32.mxu0 %vm1475_vm0, %v1474_v0  ;;  %1303 = vmatpush3.msra.mxu1 %v588_v2  ;;  %v583_v6 = vld [vmem:[%s1757_s1] sm:$0xff]  ;;  %v942_v46 = vld [vmem:[%s1763_s7 + $0x8] sm:$0xff]  ;;  %s1479_s27 = smov 8  }
  0x33   : > { %1304 = vmatprep.subr.mxu1 %v1474_v0  ;;  %v662_v7 = vld [vmem:[%s1762_s6] sm:$0x3]  ;;  %858 = vrot.lane.b32.xlu1 %v584_v5, %s1477_s18  ;;  %v751_v18 = vsub.s32 0, %v750_v17  ;;  %v843_v20 = vsub.s32 1, %v750_v17  ;;  %s1784_s25 = smov (!%p458_p8, %s1564_s25), 1 }
  0x34   : > { %1305 = vmatpush3.msra.mxu1 %v587_v3  ;;  %1296 = vmatpush3.xpose.msk.msra.mxu0 %vm479_vm1, %v476_v13  ;;  %v475_v14 = vld [vmem:[%s1756_s0] sm:$0xff]  ;;  %s1252_s24 = sshll.u32 %s1784_s25, 2 }
  0x35   : > { %1307 = vmatmul.mubr.msk.f32.vlgmr.msra.gmra.mxu1 %vm479_vm1, %v586_v4  ;;  %1309 = vmatprep.subr.mxu1 %v1474_v0  ;;  %v478_v15 = vld [vmem:[%s477_s13] sm:$0xff]  ;;  %s461_s23 = scalar_lea.vmem %s1758_s2, %s1252_s24  ;;  %s1720_s24 = sshll.u32 %s1784_s25, 3 }
  0x36   : > { %1310 = vmatpush3.xpose.msk.msra.mxu1 %vm479_vm1, %v584_v5  ;;  %1313 = vmatprep.mubr.msk.f32.mxu1 %vm1475_vm0, %v1474_v0  ;;  %v742_v36 = vld [vmem:[%s461_s23] sm:$0xf]  ;;  %s465_s23 = scalar_lea.vmem %s1759_s3, %s1720_s24 }
  0x37   : > { %1311 = vmatprep.subr.mxu1 %v1474_v0  ;;  %856 = vrot.lane.b32.xlu1 %v583_v6, %s1477_s18  ;;  %v743_v38 = vunpack.c.l.bf16 %v742_v36  ;;  %v941_v47 = vld [vmem:[%s1763_s7] sm:$0xff] }
  0x38   : > { %1297 = vmatprep.subr.mxu0 %v1474_v0  ;;  %v1026_v54 = vld [vmem:[%s1765_s9] sm:$0xff] }
  0x39   : > { %1298 = vmatpush3.xpose.msk.msra.mxu0 %vm479_vm1, %v475_v14  ;;  %v1269_v55 = vld [vmem:[%s1764_s8] ss:$0 sm:$0xff] }
  0x3a   : > { %1312 = vmatpush3.xpose.msk.msra.mxu1 %vm479_vm1, %v583_v6  ;;  %1316 = vmatprep.subr.mxu0 %v1474_v0 }
  0x3b   : > { %1330 = vmatprep.subr.mxu1 %v1474_v0 }
  0x3c   : > { %1300 = vmatmul.mubr.msk.f32.vlgmr.msra.gmra.mxu0 %vm479_vm1, %v478_v15 }
  0x3d   : > { %1314 = vmatmul.mubr.msk.f32.vlgmr.msra.gmra.mxu1 %vm479_vm1, %v662_v7  ;;  %1317 = vmatpush3.msra.mxu0 %v584_v5 }
  0x3e   : > { %1334 = vmatprep.mubr.msk.f32.mxu1 %vm1475_vm0, %v1474_v0  ;;  %1320 = vmatprep.mubr.msk.f32.mxu0 %vm1475_vm0, %v1474_v0 }
  0x3f   : > { %1318 = vmatprep.subr.mxu0 %v1474_v0  ;;  %1331 = vmatpush3.msra.mxu1 %v942_v46 }
  0x40   : > { %1319 = vmatpush3.msra.mxu0 %v583_v6  ;;  %1332 = vmatprep.subr.mxu1 %v1474_v0 }
  0x41   : > { %1323 = vmatprep.subr.mxu0 %v1474_v0  ;;  %1333 = vmatpush3.msra.mxu1 %v941_v47 }
  0xa5   : > { %v859_v37 = vpop.permute.xlu1 %858 }
  0xa9   : > { %v857_v41 = vpop.permute.xlu1 %856 }
  0xf5   : > { %v658_v8 = vpop.f32.mrf.mxu1 }
  0xf6   : > { %746 = vperm.xlu0 %1387, %v658_v8  }
  0xf7   : > { %v1308_v9 = vpop.f32.mrf.mxu1 }
  0xf8   : > { %v565_v9 = vld [vmem:[%s465_s23] sm:$0xff] }
  0xfa   : > { %1388 = vset.pattern.permute.xlu0 %v1478_v10  ;;  %v571_v10 = vld [vmem:[%s406_s16] sm:$0xff]  ;;  %s473_s16 = scalar_lea.vmem %s1768_s12, %s1720_s24 }
  0xfb   : > { %838 = vperm.xlu0 %1388, %v658_v8  }
  0xfc   : > { %v555_v44 = vpop.f32.mrf.mxu0 }
  0xfd   : > { %v738_v11 = vpop.f32.mrf.mxu1  ;;  %v1260_v61 = vmul.f32 -1.442695, %v555_v44 }
  0xfe   : > { %v752_v19 = vrot.slane %v738_v11, %v751_v18  ;;  %v844_v24 = vrot.slane %v738_v11, %v843_v20  ;;  %v1301_v45 = vpop.f32.mrf.mxu0  ;;  %v1271_v11 = vld [vmem:[%s1766_s10] ss:$0 sm:$0xff] }
  0xff   : > { %v1315_v12 = vpop.f32.mrf.mxu1 }
 0x171   : > { %v747_v21 = vpop.permute.xlu0 %746 }
 0x172   : > { %v753_v22 = vadd.f32 %v752_v19, %v747_v21 }
 0x174   : > { %vm754_vm2 = vcmp.gt.f32.partialorder %v753_v22, 0.0  ;;  %v755_v23 = vmul.f32 0.01, %v753_v22 }
 0x176   : > { %v756_v25 = vsel %vm754_vm2, %v753_v22, %v755_v23  ;;  %v839_v26 = vpop.permute.xlu0 %838 }
 0x177   : > { %v1265_v27 = vmul.f32 -1.442695, %v756_v25  ;;  %v845_v28 = vadd.f32 %v844_v24, %v839_v26 }
 0x179   : > { %1389 = vpow2.f32 %v1265_v27  ;;  %vm846_vm3 = vcmp.gt.f32.partialorder %v845_v28, 0.0  ;;  %v847_v29 = vmul.f32 0.01, %v845_v28 }
 0x17b   : > { %v848_v30 = vsel %vm846_vm3, %v845_v28, %v847_v29 }
 0x17c   : > { %v1267_v31 = vmul.f32 -1.442695, %v848_v30 }
 0x17e   : > { %1391 = vpow2.f32 %v1267_v31 }
 0x186   : > { %v1390_v32 = vpop.eup %1389 }
 0x187   : > { %v760_v33 = vadd.f32 1.0, %v1390_v32 }
 0x189   : > { %1393 = vrcp.f32 %v760_v33 }
 0x18b   : > { %v1392_v34 = vpop.eup %1391 }
 0x18c   : > { %v852_v35 = vadd.f32 1.0, %v1392_v34 }
 0x18e   : > { %1395 = vrcp.f32 %v852_v35 }
 0x18f   : > { %1397 = vpow2.f32 %v1260_v61 }
 0x196   : > { %v1394_v39 = vpop.eup %1393 }
 0x197   : > { %v763_v40 = vmul.f32 %v1394_v39, %v743_v38 }
 0x199   : > { %1321 = vmatmul.mubr.msk.f32.vlgmr.msra.gmra.mxu0 %vm479_vm1, %v763_v40 }
 0x19a   : > { %1324 = vmatpush3.msra.mxu0 %v859_v37  ;;  %1327 = vmatprep.mubr.msk.f32.mxu0 %vm1475_vm0, %v1474_v0 }
 0x19b   : > { %v1396_v42 = vpop.eup %1395  ;;  %1325 = vmatprep.subr.mxu0 %v1474_v0 }
 0x19c   : > { %1326 = vmatpush3.msra.mxu0 %v857_v41  ;;  %v855_v43 = vmul.f32 %v1396_v42, %v743_v38  ;;  %v1398_v62 = vpop.eup %1397 }
 0x19d   : > { %1337 = vmatprep.subr.mxu0 %v1474_v0  ;;  %v562_v63 = vadd.f32 1.0, %v1398_v62 }
 0x19e   : > { %1328 = vmatmul.mubr.msk.f32.vlgmr.msra.gmra.mxu0 %vm479_vm1, %v855_v43 }
 0x19f   : > { %1339 = vmatprep.mubr.msk.f32.mxu0 %vm1475_vm0, %v1474_v0  ;;  %1338 = vmatpush3.msra.mxu0 %v1026_v54  ;;  %1399 = vrcp.f32 %v562_v63 }
 0x1ac   : > { %v1400_v0 = vpop.eup %1399 }
 0x1ad   : > { %v566_v1 = vadd.f32 0.0001, %v1400_v0  ;;  %v572_v2 = vsub.f32 1.0001, %v1400_v0 }
 0x1af   : > { %1401 = vlog2.f32 %v566_v1 }
 0x1b0   : > { %1403 = vlog2.f32 %v572_v2 }
 0x1bc   : > { %v1402_v3 = vpop.eup %1401 }
 0x1bd   : > { %v1404_v4 = vpop.eup %1403  ;;  %v568_v5 = vmul.f32 0.6931472, %v1402_v3 }
 0x1be   : > { %v574_v6 = vmul.f32 0.6931472, %v1404_v4 }
 0x1bf   : > { %v569_v7 = vsub.f32 0.0, %v568_v5 }
 0x1c0   : > { %v575_v8 = vsub.f32 0.0, %v574_v6 }
 0x1c1   : > { %v570_v12 = vmul.f32 %v569_v7, %v565_v9 }
 0x1c2   : > { %v576_v13 = vmul.f32 %v575_v8, %v571_v10 }
 0x1c4   : > { %v577_v18 = vadd.f32 %v576_v13, %v570_v12 }
 0x1c6   : > { %v578_v19 = vsel %vm479_vm1, %v577_v18, 0.0 }
 0x259   : > { %v833_v48 = vpop.f32.mrf.mxu0 }
 0x25b   : > { %v1322_v49 = vpop.f32.mrf.mxu0 }
 0x25e   : > { %v931_v50 = vpop.f32.mrf.mxu0 }
 0x25f   : > { %936 = vrot.lane.b32.xlu1 %v931_v50, %s1479_s27  ;;  %s469_s27 = scalar_lea.vmem %s1767_s11, %s1720_s24 }
 0x260   : > { %v1329_v51 = vpop.f32.mrf.mxu0 }
 0x2d1   : > { %v937_v52 = vpop.permute.xlu1 %936 }
 0x2d2   : > { %v940_v53 = vsel %vm939_vm4, %v833_v48, %v937_v52 }
 0x2d3   : > { %1335 = vmatmul.mubr.msk.f32.vlgmr.msra.gmra.mxu1 %vm479_vm1, %v940_v53 }
 0x393   : > { %v1019_v56 = vpop.f32.mrf.mxu1 }
 0x394   : > { %v1020_v57 = vadd.f32 %v1269_v55, %v1019_v56 }
 0x395   : > { %v1336_v58 = vpop.f32.mrf.mxu1 }
 0x396   : > { %vm1023_vm5 = vcmp.gt.f32.partialorder %v1020_v57, 0.0  ;;  %v1024_v59 = vmul.f32 0.01, %v1020_v57 }
 0x398   : > { %v1025_v60 = vsel %vm1023_vm5, %v1020_v57, %v1024_v59 }
 0x399   : > { %1340 = vmatmul.mubr.msk.f32.vlgmr.msra.gmra.mxu0 %vm939_vm4, %v1025_v60 }
 0x459   : > { %v1103_v14 = vpop.f32.mrf.mxu0 }
 0x45a   : > { %v1104_v15 = vadd.f32 %v1271_v11, %v1103_v14 }
 0x45b   : > { %v1341_v16 = vpop.f32.mrf.mxu0 }
 0x45c   : > { %v1108_v17 = vsel %vm1107_vm6, %v1104_v15, -inf }
 0x45d   : > { %1109 = vmax.xlane.f32.xlu0 %v1108_v17 }
 0x461   : > { %579 = vadd.xlane.f32.xlu0 %v578_v19 }
 0x4e6   : > { %v1110_v20 = vpop.xlane.xlu0 %1109 }
 0x4e7   : > { %v1111_v21 = vsub.f32 %v1104_v15, %v1110_v20 }
 0x4e9   : > { %v1112_v22 = vmul.f32 1.442695, %v1111_v21 }
 0x4ea   : > { %v580_v23 = vpop.xlane.xlu0 %579 }
 0x4eb   : > { %1405 = vpow2.f32 %v1112_v22  ;;  %582 = vst.msk [vmem:[%s473_s16] sm:$0xff] %vm581_vm7, %v580_v23 }
 0x4f8   : > { %v1406_v24 = vpop.eup %1405 }
 0x4f9   : > { %v1114_v25 = vadd.f32 0.0001, %v1406_v24 }
 0x4fb   : > { %v1115_v26 = vsel %vm1107_vm6, %v1114_v25, 0.0 }
 0x4fc   : > { %1116 = vadd.xlane.f32.xlu1 %v1115_v26 }
 0x585   : > { %v1117_v27 = vpop.xlane.xlu1 %1116 }
 0x586   : > { %1407 = vrcp.f32 %v1117_v27 }
 0x593   : > { %v1408_v28 = vpop.eup %1407 }
 0x594   : > { %v1119_v29 = vmul.f32 %v1408_v28, %v1114_v25 }
 0x596   : > { %1120 = vst.msk [vmem:[%s469_s27] sm:$0xff] %vm1107_vm6, %v1119_v29 }
 0x597 PF: > { %s1778_s14 = sld [smem:[#allocation5_spill]]  ;;  %p23_p9 = scmp.ge.s32.totalorder %s1567_s26, 4  }
 0x598   : > { %s1779_s23 = sld [smem:[#allocation6_spill]]  ;;  %s1780_s21 = smov %s1463_s22 }
 0x599   : > { %s1782_s24 = smov %s1567_s26  ;;  %25 = sbr.rel (!%p23_p9) target bundleno = 3 (0x3), region = 124 }
 0x59d   : > { %s1781_s22 = smov %s1778_s14 }
 0x59e   :  { %1154 = vsyncpa [#allocation3], 1 }
 0x59f   :  { %1156 = vsyncpa [#allocation3 + $0x1], 1 }

</bundles_post_ra>
